<compile_context>
chip_gen: v6e
topology: v6e:2x2x1
jax: 0.10.0
libtpu: 0.0.40
codegen_flags: <defaults>
</compile_context>

<pallas_src>
import functools

import jax
import jax.numpy as jnp
from jax import lax
from jax.experimental import pallas as pl
from jax.experimental.pallas import tpu as pltpu


def _round_up(x: int, m: int) -> int:
    return (x + m - 1) // m * m


def _lm_head_kernel(x_ref, w_ref, b_ref, o_ref, m_ref, l_ref, *, probabilities: bool):
    # x_ref: (tm, E)  activation row tile (resident across phase / vocab axes)
    # w_ref: (tn, E)  weight tile in native nn.Linear (V, E) layout
    # b_ref: (1, tn)  bias tile
    # o_ref: (tm, tn) output tile
    # m_ref, l_ref: (tm, 1) f32 scratch (running max / running sum of exp)
    phase = pl.program_id(1)
    j = pl.program_id(2)

    # MXU consumes the (V, E) weight directly: contract last dim of x with last dim of w.
    logits = lax.dot_general(
        x_ref[...], w_ref[...],
        dimension_numbers=(((1,), (1,)), ((), ())),
        preferred_element_type=jnp.float32,
    )
    logits = logits + b_ref[...].astype(jnp.float32)

    if not probabilities:
        o_ref[...] = logits.astype(o_ref.dtype)
    else:
        # Two-phase online softmax over the tiled vocab axis.
        @pl.when(phase == 0)
        def _():
            @pl.when(j == 0)
            def _():
                m_ref[...] = jnp.full_like(m_ref, -jnp.inf)
                l_ref[...] = jnp.zeros_like(l_ref)

            m_prev = m_ref[...]
            m_new = jnp.maximum(m_prev, jnp.max(logits, axis=-1, keepdims=True))
            l_ref[...] = l_ref[...] * jnp.exp(m_prev - m_new) + jnp.sum(
                jnp.exp(logits - m_new), axis=-1, keepdims=True)
            m_ref[...] = m_new
            # Placeholder write (overwritten by phase 1); keeps the output buffer defined.
            o_ref[...] = logits.astype(o_ref.dtype)

        @pl.when(phase == 1)
        def _():
            l = l_ref[...]
            inv = pl.reciprocal(l, approx=True)      # EUP vrcp (free slot)
            inv = inv * (2.0 - l * inv)              # one Newton step -> ~f32 accuracy
            o_ref[...] = (jnp.exp(logits - m_ref[...]) * inv).astype(o_ref.dtype)


def language_head(x: jax.Array, weight: jax.Array, bias: jax.Array,
                  probabilities: bool = False, *,
                  tm: int = 256, tn: int = 512,
                  out_dtype=None,
                  vmem_limit_bytes: int = 56 * 1024 * 1024) -> jax.Array:
    """x: (B, S, E); weight: (V, E) [PyTorch nn.Linear layout]; bias: (V,)."""
    B, S, E = x.shape
    V, E_w = weight.shape
    assert E_w == E and bias.shape == (V,)
    out_dtype = x.dtype if out_dtype is None else out_dtype

    M = B * S
    row_pack = 16 if x.dtype == jnp.bfloat16 else 8
    tm_eff = min(tm, _round_up(M, row_pack))
    tn_eff = min(tn, _round_up(V, 128))
    M_pad = _round_up(M, tm_eff)
    V_pad = _round_up(V, tn_eff)

    x2d = x.reshape(M, E)
    if M_pad != M:
        x2d = jnp.pad(x2d, ((0, M_pad - M), (0, 0)))
    w = weight
    b = bias
    if V_pad != V:
        w = jnp.pad(w, ((0, V_pad - V), (0, 0)))
        # Very negative bias in padded vocab slots: exp underflows to 0, so padded
        # columns never contribute to the softmax denominator.
        b = jnp.pad(b, (0, V_pad - V), constant_values=-1e30)
    b2d = b.reshape(1, V_pad)

    n_phases = 2 if probabilities else 1
    grid = (M_pad // tm_eff, n_phases, V_pad // tn_eff)

    kernel = functools.partial(_lm_head_kernel, probabilities=probabilities)

    out2d = pl.pallas_call(
        kernel,
        out_shape=jax.ShapeDtypeStruct((M_pad, V_pad), out_dtype),
        grid_spec=pltpu.PrefetchScalarGridSpec(
            num_scalar_prefetch=0,
            grid=grid,
            in_specs=[
                pl.BlockSpec((tm_eff, E), lambda i, p, j: (i, 0)),   # row tile (resident over p, j)
                pl.BlockSpec((tn_eff, E), lambda i, p, j: (j, 0)),   # streamed weight tile, native layout
                pl.BlockSpec((1, tn_eff), lambda i, p, j: (0, j)),   # bias tile
            ],
            out_specs=pl.BlockSpec((tm_eff, tn_eff), lambda i, p, j: (i, j)),
            scratch_shapes=[
                pltpu.VMEM((tm_eff, 1), jnp.float32),   # running max
                pltpu.VMEM((tm_eff, 1), jnp.float32),   # running sum of exp
            ],
        ),
        compiler_params=pltpu.CompilerParams(
            dimension_semantics=(
                ("parallel", "arbitrary", "arbitrary") if probabilities
                else ("parallel", "parallel", "parallel")
            ),
            vmem_limit_bytes=vmem_limit_bytes,
        ),
    )(x2d, w, b2d)

    return out2d[:M, :V].reshape(B, S, V)


if __name__ == "__main__":
    # Small shapes consistent with the module: (batch, seq, embedding_dim) -> vocab.
    B, S, E, V = 2, 8, 32, 128

    key = jax.random.PRNGKey(0)
    kx, kw, kb = jax.random.split(key, 3)

    x = jax.random.normal(kx, (B, S, E), dtype=jnp.float32)
    # Deterministic init mimicking nn.Linear's shapes: weight (V, E), bias (V,)
    weight = jax.random.normal(kw, (V, E), dtype=jnp.float32) * (1.0 / jnp.sqrt(E))
    bias = jax.random.normal(kb, (V,), dtype=jnp.float32) * 0.01

    # Logits path
    logits = jax.block_until_ready(language_head(x, weight, bias, probabilities=False))
    # Probabilities path (softmax over dim=2)
    probs = jax.block_until_ready(language_head(x, weight, bias, probabilities=True))

    # Reference check in plain JAX.
    ref_logits = jnp.einsum("bse,ve->bsv", x, weight) + bias
    ref_probs = jax.nn.softmax(ref_logits, axis=2)

    assert logits.shape == (B, S, V) and probs.shape == (B, S, V)
    assert jnp.allclose(logits, ref_logits, atol=1e-4, rtol=1e-4)
    assert jnp.allclose(probs, ref_probs, atol=1e-4, rtol=1e-3)
    assert jnp.allclose(jnp.sum(probs, axis=2), 1.0, atol=1e-4)

    # bf16 streaming path (what you'd use on v6e/v7x): halves weight HBM traffic and
    # feeds the MXU at its bf16 rate; accumulation stays f32 inside the kernel.
    logits_bf16 = jax.block_until_ready(
        language_head(x.astype(jnp.bfloat16), weight.astype(jnp.bfloat16),
                      bias.astype(jnp.float32), probabilities=False,
                      out_dtype=jnp.float32))
    assert jnp.allclose(logits_bf16, ref_logits, atol=5e-2, rtol=5e-2)

    print("KERNEL_OK")
</pallas_src>

<mosaic_0001>
module attributes {stable_mosaic.version = 11 : i64} {
  func.func @_lm_head_kernel(%arg0: i32, %arg1: i32, %arg2: i32, %arg3: memref<16x32xf32, #tpu.memory_space<vmem>>, %arg4: memref<128x32xf32, #tpu.memory_space<vmem>>, %arg5: memref<1x128xf32, #tpu.memory_space<vmem>>, %arg6: memref<16x128xf32, #tpu.memory_space<vmem>>, %arg7: memref<16x1xf32, #tpu.memory_space<vmem>>, %arg8: memref<16x1xf32, #tpu.memory_space<vmem>>) attributes {dimension_semantics = [#tpu.dimension_semantics<parallel>, #tpu.dimension_semantics<parallel>, #tpu.dimension_semantics<parallel>], iteration_bounds = array<i64: 1, 1, 1>, scalar_prefetch = 0 : i64, scratch_operands = 2 : i64, tpu.core_type = #tpu.core_type<tc>, window_params = [{transform_indices = @transform_0, window_bounds = array<i64: 16, 32>}, {transform_indices = @transform_1, window_bounds = array<i64: 128, 32>}, {transform_indices = @transform_2, window_bounds = array<i64: 1, 128>}, {transform_indices = @transform_3, window_bounds = array<i64: 16, 128>}]} {
    %c0 = arith.constant 0 : index
    %c0_0 = arith.constant 0 : index
    %0 = vector.load %arg3[%c0, %c0_0] : memref<16x32xf32, #tpu.memory_space<vmem>>, vector<16x32xf32>
    %c0_1 = arith.constant 0 : index
    %c0_2 = arith.constant 0 : index
    %1 = vector.load %arg4[%c0_1, %c0_2] : memref<128x32xf32, #tpu.memory_space<vmem>>, vector<128x32xf32>
    %cst = arith.constant dense<0.000000e+00> : vector<16x128xf32>
    %2 = tpu.matmul %0, %1, %cst {dimension_numbers = #tpu.dot_dimension_numbers<[1], [1], [0], [0], [0, 0, 1, 0], [], []>} : vector<16x32xf32>, vector<128x32xf32>, vector<16x128xf32> -> vector<16x128xf32>
    %c0_3 = arith.constant 0 : index
    %c0_4 = arith.constant 0 : index
    %3 = vector.load %arg5[%c0_3, %c0_4] : memref<1x128xf32, #tpu.memory_space<vmem>>, vector<1x128xf32>
    %4 = vector.broadcast %3 : vector<1x128xf32> to vector<16x128xf32>
    %5 = arith.addf %2, %4 : vector<16x128xf32>
    %c0_5 = arith.constant 0 : index
    %c0_6 = arith.constant 0 : index
    %6 = vector.load %arg6[%c0_5, %c0_6] : memref<16x128xf32, #tpu.memory_space<vmem>>, vector<16x128xf32>
    tpu.vector_store %arg6[%c0_5, %c0_6], %5 {strides = array<i32>} : memref<16x128xf32, #tpu.memory_space<vmem>>, vector<16x128xf32>,
    return
  }
  func.func @transform_0(%arg0: i32, %arg1: i32, %arg2: i32) -> (i32, i32) {
    %c0_i32 = arith.constant 0 : i32
    %c0_i32_0 = arith.constant 0 : i32
    return %arg0, %c0_i32 : i32, i32
  }
  func.func @transform_1(%arg0: i32, %arg1: i32, %arg2: i32) -> (i32, i32) {
    %c0_i32 = arith.constant 0 : i32
    %c0_i32_0 = arith.constant 0 : i32
    return %arg2, %c0_i32 : i32, i32
  }
  func.func @transform_2(%arg0: i32, %arg1: i32, %arg2: i32) -> (i32, i32) {
    %c0_i32 = arith.constant 0 : i32
    %c0_i32_0 = arith.constant 0 : i32
    return %c0_i32, %arg2 : i32, i32
  }
  func.func @transform_3(%arg0: i32, %arg1: i32, %arg2: i32) -> (i32, i32) {
    %c0_i32 = arith.constant 0 : i32
    return %arg0, %arg2 : i32, i32
  }
}

</mosaic_0001>

<bundles_post_ra>
// kernel: tpu_custom_call.1
= control target key start
LH: loop header
LB: loop body
LE: loop exit
PB: predicated region body
PF: predicated region fallthrough
CT: control target
= control target key end

     0   :  { %vm40_vm0 = vcmask 261120   ;;  %s402_s0 = inlined_call_operand.vmem [shape: f32[16,32], index: 0, kind: input, shape index: {}]   ;;  %s403_s1 = inlined_call_operand.vmem [shape: f32[128,32], index: 1, kind: input, shape index: {}]   ;;  %s404_s2 = inlined_call_operand.vmem [shape: f32[1,128], index: 2, kind: input, shape index: {}]   ;;  %s405_s3 = inlined_call_operand.hbm [shape: f32[16,128], index: 3, kind: output, shape index: {}]  }
   0x1   :  { %v32_v0 = vld [vmem:[%s403_s1 + $0x78] sm:$0xff]  ;;  %v31_v1 = vld [vmem:[%s403_s1 + $0x70] sm:$0xff]  ;;  %v30_v2 = vld [vmem:[%s403_s1 + $0x68] sm:$0xff] }
   0x2   :  { %225 = vmatprep.subr.msk.mxu0 %vm40_vm0, %v32_v0  ;;  %v15_v3 = vld [vmem:[%s402_s0] sm:$0xff] }
   0x3   :  { %226 = vmatpush3.xpose.msk.msra.mxu0 %vm40_vm0, %v32_v0  ;;  %257 = vmatprep.mubr.msk.f32.mxu0 %vm40_vm0, %v15_v3 }
   0x4   :  { %227 = vmatprep.subr.msk.mxu0 %vm40_vm0, %v31_v1 }
   0x7   :  { %228 = vmatpush3.xpose.msk.msra.mxu0 %vm40_vm0, %v31_v1 }
   0x8   :  { %8 = vsyncpa [#allocation5], 0  ;;  %229 = vmatprep.subr.msk.mxu0 %vm40_vm0, %v30_v2  ;;  %v29_v4 = vld [vmem:[%s403_s1 + $0x60] sm:$0xff]  ;;  %v28_v5 = vld [vmem:[%s403_s1 + $0x58] sm:$0xff]  ;;  %s285_s23 = smov [#allocation4]  }
   0x9   :  { %v27_v6 = vld [vmem:[%s403_s1 + $0x50] sm:$0xff]  ;;  %v26_v7 = vld [vmem:[%s403_s1 + $0x48] sm:$0xff]  ;;  %v25_v8 = vld [vmem:[%s403_s1 + $0x40] sm:$0xff]  ;;  %s177_s24 = sshll.u32 %s285_s23, 4  ;;  %s178_s24 = int_to_ptr.vmem [resolvable:$true] %s177_s24 }
   0xa   :  { %v24_v9 = vld [vmem:[%s403_s1 + $0x38] sm:$0xff]  ;;  %v23_v10 = vld [vmem:[%s403_s1 + $0x30] sm:$0xff]  ;;  %v22_v11 = vld [vmem:[%s403_s1 + $0x28] sm:$0xff]  ;;  %p268_p1 = scmp.lt.s32.totalorder %s178_s24, %s178_s24 }
   0xb   :  { %230 = vmatpush3.xpose.msk.msra.mxu0 %vm40_vm0, %v30_v2  ;;  %v21_v12 = vld [vmem:[%s403_s1 + $0x20] sm:$0xff]  ;;  %v20_v13 = vld [vmem:[%s403_s1 + $0x18] sm:$0xff]  ;;  %v19_v14 = vld [vmem:[%s403_s1 + $0x10] sm:$0xff] }
   0xc   :  { %231 = vmatprep.subr.msk.mxu0 %vm40_vm0, %v29_v4  ;;  %v18_v15 = vld [vmem:[%s403_s1 + $0x8] sm:$0xff]  ;;  %v17_v16 = vld [vmem:[%s403_s1] sm:$0xff]  ;;  %s263_s1 = scalar_lea.vmem %s178_s24, 256 }
   0xd   :  { %v16_v17 = vld [vmem:[%s402_s0 + $0x8] sm:$0xff]  ;;  %v188_v18 = vld [vmem:[%s404_s2] ss:$0 sm:$0xff]  ;;  %p264_p0 = scmp.ne.s32.totalorder %s178_s24, %s263_s1  ;;  %p269_p2 = scmp.lt.s32.totalorder %s263_s1, %s263_s1 }
   0xf   :  { %232 = vmatpush3.xpose.msk.msra.mxu0 %vm40_vm0, %v29_v4  ;;  %p270_p3 = por %p269_p2, %p268_p1 }
  0x10   :  { %233 = vmatprep.subr.msk.mxu0 %vm40_vm0, %v28_v5 }
  0x11   :  { %p271_p4 = pnand %p270_p3, %p264_p0 }
  0x13   :  { %234 = vmatpush3.xpose.msk.msra.mxu0 %vm40_vm0, %v28_v5 }
  0x14   :  { %235 = vmatprep.subr.msk.mxu0 %vm40_vm0, %v27_v6 }
  0x17   :  { %236 = vmatpush3.xpose.msk.msra.mxu0 %vm40_vm0, %v27_v6 }
  0x18   :  { %237 = vmatprep.subr.msk.mxu0 %vm40_vm0, %v26_v7 }
  0x1b   :  { %238 = vmatpush3.xpose.msk.msra.mxu0 %vm40_vm0, %v26_v7 }
  0x1c   :  { %239 = vmatprep.subr.msk.mxu0 %vm40_vm0, %v25_v8 }
  0x1f   :  { %240 = vmatpush3.xpose.msk.msra.mxu0 %vm40_vm0, %v25_v8 }
  0x20   :  { %241 = vmatprep.subr.msk.mxu0 %vm40_vm0, %v24_v9 }
  0x23   :  { %242 = vmatpush3.xpose.msk.msra.mxu0 %vm40_vm0, %v24_v9 }
  0x24   :  { %243 = vmatprep.subr.msk.mxu0 %vm40_vm0, %v23_v10 }
  0x27   :  { %244 = vmatpush3.xpose.msk.msra.mxu0 %vm40_vm0, %v23_v10 }
  0x28   :  { %245 = vmatprep.subr.msk.mxu0 %vm40_vm0, %v22_v11 }
  0x2b   :  { %246 = vmatpush3.xpose.msk.msra.mxu0 %vm40_vm0, %v22_v11 }
  0x2c   :  { %247 = vmatprep.subr.msk.mxu0 %vm40_vm0, %v21_v12 }
  0x2f   :  { %248 = vmatpush3.xpose.msk.msra.mxu0 %vm40_vm0, %v21_v12 }
  0x30   :  { %249 = vmatprep.subr.msk.mxu0 %vm40_vm0, %v20_v13 }
  0x33   :  { %250 = vmatpush3.xpose.msk.msra.mxu0 %vm40_vm0, %v20_v13 }
  0x34   :  { %251 = vmatprep.subr.msk.mxu0 %vm40_vm0, %v19_v14 }
  0x37   :  { %252 = vmatpush3.xpose.msk.msra.mxu0 %vm40_vm0, %v19_v14 }
  0x38   :  { %253 = vmatprep.subr.msk.mxu0 %vm40_vm0, %v18_v15 }
  0x3b   :  { %254 = vmatpush3.xpose.msk.msra.mxu0 %vm40_vm0, %v18_v15 }
  0x3c   :  { %255 = vmatprep.subr.msk.mxu0 %vm40_vm0, %v17_v16 }
  0x3f   :  { %256 = vmatpush3.xpose.msk.msra.mxu0 %vm40_vm0, %v17_v16 }
  0x42   :  { %258 = vmatmul.mubr.msk.f32.vlgmr.msra.gmra.mxu0 %vm40_vm0, %v16_v17 }
 0x102   :  { %v259_v19 = vpop.f32.mrf.mxu0 }
 0x103   :  { %v167_v20 = vadd.f32 %v259_v19, %v188_v18 }
 0x104   :  { %v161_v21 = vpop.f32.mrf.mxu0 }
 0x105   :  { %171 = vst [vmem:[#allocation4 + $0x8] sm:$0xff] %v167_v20  ;;  %v162_v22 = vadd.f32 %v188_v18, %v161_v21 }
 0x107   :  { %170 = vst [vmem:[#allocation4] sm:$0xff] %v162_v22 }
 0x108   :  { %274 = shalt.err (!%p271_p4)
}
 0x109   :  { %s286_s0 = smov 128   ;;  %s287_s25 = smov 8  }
 0x10a   :  { %183 = dma.vmem_to_hbm [thread:$0]  %s178_s24, 256, %s405_s3, [#allocation5], %s286_s0, %s286_s0, %s287_s25  }
 0x10b   :  { %283 = dma.done.wait [#allocation5], 256  }
 0x10c   :  { %284 = vsyncadd [#allocation5], 4294967040 }
 0x10d   :  { %187 = vsyncpa [#allocation5], 1 }

</bundles_post_ra>
